<compile_context>
chip_gen: v7x
topology: tpu7x:2x2x1
jax: 0.10.0
libtpu: 0.0.40
codegen_flags: <defaults>
</compile_context>

<pallas_src>
import functools
import math

import jax
import jax.numpy as jnp
from jax.experimental import pallas as pl
from jax.experimental.pallas import tpu as pltpu

LN_EPS = 1e-5      # torch.nn.LayerNorm default
LANE = 128         # TPU lane width


def _round_up(x, m):
    return ((x + m - 1) // m) * m


def _layernorm_fused(x, gamma, beta, n_true):
    """LayerNorm over the last axis where only the first `n_true` columns hold
    real data (remaining columns are guaranteed-zero padding).  Single pass:
    var = E[x^2] - mu^2 (two independent cross-lane reductions), clamped at 0
    to guard against catastrophic cancellation."""
    inv_n = 1.0 / float(n_true)
    s = jnp.sum(x, axis=-1, keepdims=True)
    ss = jnp.sum(x * x, axis=-1, keepdims=True)
    mu = s * inv_n
    var = jnp.maximum(ss * inv_n - mu * mu, 0.0)
    return (x - mu) * jax.lax.rsqrt(var + LN_EPS) * gamma + beta


def actor_kernel(x_ref,
                 w1_ref, b1_ref, g1_ref, be1_ref,
                 w2_ref, b2_ref, g2_ref, be2_ref,
                 w3_ref, b3_ref,
                 o_ref, *, h1_true, h2_true):
    # fc1 -> LayerNorm -> relu   (post-matmul math in f32)
    x = x_ref[...].astype(w1_ref.dtype)            # no-op when dtypes already match
    h = jnp.dot(x, w1_ref[...], preferred_element_type=jnp.float32) + b1_ref[...]
    h = _layernorm_fused(h, g1_ref[...], be1_ref[...], h1_true)
    h = jnp.maximum(h, 0.0).astype(w2_ref.dtype)

    # fc2 -> LayerNorm -> relu
    h = jnp.dot(h, w2_ref[...], preferred_element_type=jnp.float32) + b2_ref[...]
    h = _layernorm_fused(h, g2_ref[...], be2_ref[...], h2_true)
    h = jnp.maximum(h, 0.0).astype(w3_ref.dtype)

    # fc3 -> tanh.  w3/b3/output keep the TRUE n_actions width: a masked store
    # of a few lanes is far cheaper than 32x extra HBM write bandwidth.
    out = jnp.dot(h, w3_ref[...], preferred_element_type=jnp.float32) + b3_ref[...]
    o_ref[...] = jnp.tanh(out).astype(o_ref.dtype)


def init_actor_params(key, input_dim, hidden1, hidden2, n_actions):
    """Deterministic init mirroring the PyTorch __init__ (uniform ranges).
    Weights are stored pre-transposed as (in, out)."""
    ks = jax.random.split(key, 6)
    f1 = 1.0 / math.sqrt(hidden1)    # = 1/sqrt(fc1.weight.size()[0])
    f2 = 1.0 / math.sqrt(hidden2)    # = 1/sqrt(fc2.weight.size()[0])
    f3 = 0.003

    def u(k, shape, lim):
        return jax.random.uniform(k, shape, jnp.float32, minval=-lim, maxval=lim)

    return {
        "w1": u(ks[0], (input_dim, hidden1), f1),
        "b1": u(ks[1], (1, hidden1), f1),
        "g1": jnp.ones((1, hidden1), jnp.float32),
        "be1": jnp.zeros((1, hidden1), jnp.float32),
        "w2": u(ks[2], (hidden1, hidden2), f2),
        "b2": u(ks[3], (1, hidden2), f2),
        "g2": jnp.ones((1, hidden2), jnp.float32),
        "be2": jnp.zeros((1, hidden2), jnp.float32),
        "w3": u(ks[4], (hidden2, n_actions), f3),
        "b3": u(ks[5], (1, n_actions), f3),
    }


def prepare_params(params, *, weight_dtype=jnp.float32, lane_multiple=LANE):
    """Zero-pad hidden feature dims to `lane_multiple` lanes (done ONCE, offline).
    Padded gamma/beta columns are zero so padded lanes stay exactly 0 through
    LN -> relu -> next matmul.  The fc3 output dim is NOT padded (true-width
    output writeback).  weight_dtype=bfloat16 is recommended on v6e/v7x; if the
    net is scaled past 128 hidden units use lane_multiple=256 on v6e/v7x
    (256x256 MXU tiles) and keep 128 on v5e."""
    in_dim, h1 = params["w1"].shape
    h2 = params["w2"].shape[1]
    na = params["w3"].shape[1]
    h1p = _round_up(h1, lane_multiple)
    h2p = _round_up(h2, lane_multiple)

    def pad2(a, rows, cols, dtype=jnp.float32):
        return jnp.pad(a, ((0, rows - a.shape[0]), (0, cols - a.shape[1]))).astype(dtype)

    padded = {
        "w1": pad2(params["w1"], in_dim, h1p, weight_dtype),
        "b1": pad2(params["b1"], 1, h1p),
        "g1": pad2(params["g1"], 1, h1p),     # zero-padded gamma
        "be1": pad2(params["be1"], 1, h1p),   # zero-padded beta
        "w2": pad2(params["w2"], h1p, h2p, weight_dtype),
        "b2": pad2(params["b2"], 1, h2p),
        "g2": pad2(params["g2"], 1, h2p),
        "be2": pad2(params["be2"], 1, h2p),
        "w3": pad2(params["w3"], h2p, na, weight_dtype),   # output dim at TRUE width
        "b3": pad2(params["b3"], 1, na),
    }
    meta = {"in_dim": in_dim, "h1": h1, "h2": h2, "n_actions": na,
            "h1p": h1p, "h2p": h2p}
    return padded, meta


def _resident_spec(shape):
    """Constant-index (weight-resident) BlockSpec; single-buffered since the
    block never changes across grid steps (halves its VMEM footprint)."""
    index_map = lambda i: (0, 0)
    try:
        return pl.BlockSpec(shape, index_map,
                            pipeline_mode=pl.Buffered(buffer_count=1))
    except TypeError:   # older jax without pipeline_mode / Buffered
        return pl.BlockSpec(shape, index_map)


def actor_forward(state, padded, meta, *, block_b=256, compute_dtype=None):
    """state: (B, input_dim) -> (B, n_actions) float32.

    block_b: batch tile; sweep {256, 512} -- past ~512 rows the kernel is
    within a few % of the HBM roofline and larger TB only adds VMEM pressure.
    compute_dtype: dtype of the state fed to the MXU (None = keep state dtype;
    bfloat16 recommended on v6e/v7x, keep f32 on v5e)."""
    B, in_dim = state.shape
    assert in_dim == meta["in_dim"]
    na = meta["n_actions"]

    if compute_dtype is not None and state.dtype != compute_dtype:
        state = state.astype(compute_dtype)

    # Batch tile: multiple of the sublane pack (8 f32 / 16 bf16), never larger
    # than the (rounded) batch, and clamped so that big-enough batches give
    # >= 2 grid steps (both v7x TensorCores get work; harmless on v5e/v6e).
    mult = 16 if state.dtype == jnp.bfloat16 else 8
    b_r = _round_up(B, mult)
    TB = min(_round_up(block_b, mult), b_r)
    if b_r >= 2 * mult:
        TB = min(TB, _round_up(pl.cdiv(b_r, 2), mult))
    TB = max(TB, mult)

    grid = (pl.cdiv(B, TB),)       # no wrapper-side batch pad: Pallas masks the
    batched = lambda i: (i, 0)     # partial last block; rows are independent.

    args = (state,
            padded["w1"], padded["b1"], padded["g1"], padded["be1"],
            padded["w2"], padded["b2"], padded["g2"], padded["be2"],
            padded["w3"], padded["b3"])

    in_specs = [pl.BlockSpec((TB, in_dim), batched)]
    in_specs += [_resident_spec(a.shape) for a in args[1:]]
    out_specs = pl.BlockSpec((TB, na), batched)   # TRUE-width output rows.

    kernel = functools.partial(actor_kernel,
                               h1_true=meta["h1"], h2_true=meta["h2"])

    flops = 2 * B * (in_dim * meta["h1p"]
                     + meta["h1p"] * meta["h2p"]
                     + meta["h2p"] * na)
    param_bytes = sum(int(a.size) * a.dtype.itemsize for a in args[1:])
    bytes_accessed = (int(state.size) * state.dtype.itemsize
                      + param_bytes + B * na * 4)

    out = pl.pallas_call(
        kernel,
        grid=grid,
        out_shape=jax.ShapeDtypeStruct((B, na), jnp.float32),
        in_specs=in_specs,
        out_specs=out_specs,
        compiler_params=pltpu.CompilerParams(
            dimension_semantics=("parallel",)),   # batch shards over v7x's 2 TCs
        cost_estimate=pl.CostEstimate(
            flops=int(flops),
            transcendentals=int(B * (na + 2)),    # tanh + 2 rsqrt per row
            bytes_accessed=int(bytes_accessed)),
    )(*args)
    return out


def actor_forward_ref(state, p):
    """Pure-JAX reference matching torch semantics (two-pass LayerNorm)."""
    def ln(x, g, b):
        mu = jnp.mean(x, axis=-1, keepdims=True)
        var = jnp.mean((x - mu) ** 2, axis=-1, keepdims=True)
        return (x - mu) * jax.lax.rsqrt(var + LN_EPS) * g + b

    h = jnp.maximum(ln(state @ p["w1"] + p["b1"], p["g1"], p["be1"]), 0.0)
    h = jnp.maximum(ln(h @ p["w2"] + p["b2"], p["g2"], p["be2"]), 0.0)
    return jnp.tanh(h @ p["w3"] + p["b3"])


if __name__ == "__main__":
    # Small shapes consistent with the module: input_dims=(8,), hidden=32/32, n_actions=4
    B, INPUT_DIM, H1, H2, N_ACTIONS = 2, 8, 32, 32, 4

    key = jax.random.PRNGKey(0)
    k_state, k_params, k_big, k_mid = jax.random.split(key, 4)

    state = jax.random.normal(k_state, (B, INPUT_DIM), jnp.float32)
    params = init_actor_params(k_params, INPUT_DIM, H1, H2, N_ACTIONS)
    padded, meta = prepare_params(params)   # f32; use weight_dtype=bf16 on v6e/v7x

    out = jax.block_until_ready(actor_forward(state, padded, meta))
    ref = actor_forward_ref(state, params)
    assert out.shape == (B, N_ACTIONS)
    assert jnp.allclose(out, ref, atol=1e-5, rtol=1e-5), "mismatch vs reference (B=2)"

    # Multi-step grid + partial last block (no wrapper pad): B=130, TB=64 -> grid=(3,)
    big_state = jax.random.normal(k_big, (130, INPUT_DIM), jnp.float32)
    out_big = jax.block_until_ready(actor_forward(big_state, padded, meta, block_b=64))
    ref_big = actor_forward_ref(big_state, params)
    assert out_big.shape == (130, N_ACTIONS)
    assert jnp.allclose(out_big, ref_big, atol=1e-5, rtol=1e-5), "mismatch vs reference (B=130)"

    # Megacore-split path: B=385 with block_b=512 -> TB clamped to 200, grid=(2,)
    mid_state = jax.random.normal(k_mid, (385, INPUT_DIM), jnp.float32)
    out_mid = jax.block_until_ready(actor_forward(mid_state, padded, meta, block_b=512))
    ref_mid = actor_forward_ref(mid_state, params)
    assert out_mid.shape == (385, N_ACTIONS)
    assert jnp.allclose(out_mid, ref_mid, atol=1e-5, rtol=1e-5), "mismatch vs reference (B=385)"

    print("KERNEL_OK")
</pallas_src>

<mosaic_0001>
module attributes {stable_mosaic.version = 11 : i64} {
  func.func @actor_kernel(%arg0: i32, %arg1: memref<8x8xf32, #tpu.memory_space<vmem>>, %arg2: memref<8x128xf32, #tpu.memory_space<vmem>>, %arg3: memref<1x128xf32, #tpu.memory_space<vmem>>, %arg4: memref<1x128xf32, #tpu.memory_space<vmem>>, %arg5: memref<1x128xf32, #tpu.memory_space<vmem>>, %arg6: memref<128x128xf32, #tpu.memory_space<vmem>>, %arg7: memref<1x128xf32, #tpu.memory_space<vmem>>, %arg8: memref<1x128xf32, #tpu.memory_space<vmem>>, %arg9: memref<1x128xf32, #tpu.memory_space<vmem>>, %arg10: memref<128x4xf32, #tpu.memory_space<vmem>>, %arg11: memref<1x4xf32, #tpu.memory_space<vmem>>, %arg12: memref<8x4xf32, #tpu.memory_space<vmem>>) attributes {dimension_semantics = [#tpu.dimension_semantics<parallel>], iteration_bounds = array<i64: 1>, scalar_prefetch = 0 : i64, scratch_operands = 0 : i64, tpu.core_type = #tpu.core_type<tc>, window_params = [{transform_indices = @transform_0, window_bounds = array<i64: 8, 8>}, {pipeline_mode = #tpu.pipeline_mode<synchronous>, transform_indices = @transform_1, window_bounds = array<i64: 8, 128>}, {pipeline_mode = #tpu.pipeline_mode<synchronous>, transform_indices = @transform_2, window_bounds = array<i64: 1, 128>}, {pipeline_mode = #tpu.pipeline_mode<synchronous>, transform_indices = @transform_3, window_bounds = array<i64: 1, 128>}, {pipeline_mode = #tpu.pipeline_mode<synchronous>, transform_indices = @transform_4, window_bounds = array<i64: 1, 128>}, {pipeline_mode = #tpu.pipeline_mode<synchronous>, transform_indices = @transform_5, window_bounds = array<i64: 128, 128>}, {pipeline_mode = #tpu.pipeline_mode<synchronous>, transform_indices = @transform_6, window_bounds = array<i64: 1, 128>}, {pipeline_mode = #tpu.pipeline_mode<synchronous>, transform_indices = @transform_7, window_bounds = array<i64: 1, 128>}, {pipeline_mode = #tpu.pipeline_mode<synchronous>, transform_indices = @transform_8, window_bounds = array<i64: 1, 128>}, {pipeline_mode = #tpu.pipeline_mode<synchronous>, transform_indices = @transform_9, window_bounds = array<i64: 128, 4>}, {pipeline_mode = #tpu.pipeline_mode<synchronous>, transform_indices = @transform_10, window_bounds = array<i64: 1, 4>}, {transform_indices = @transform_11, window_bounds = array<i64: 8, 4>}]} {
    %c0 = arith.constant 0 : index
    %c0_0 = arith.constant 0 : index
    %0 = vector.load %arg1[%c0, %c0_0] : memref<8x8xf32, #tpu.memory_space<vmem>>, vector<8x8xf32>
    %c0_1 = arith.constant 0 : index
    %c0_2 = arith.constant 0 : index
    %1 = vector.load %arg2[%c0_1, %c0_2] : memref<8x128xf32, #tpu.memory_space<vmem>>, vector<8x128xf32>
    %cst = arith.constant dense<0.000000e+00> : vector<8x128xf32>
    %2 = tpu.matmul %0, %1, %cst {dimension_numbers = #tpu.dot_dimension_numbers<[1], [0], [0], [1], [0, 0, 1, 1], [], []>} : vector<8x8xf32>, vector<8x128xf32>, vector<8x128xf32> -> vector<8x128xf32>
    %c0_3 = arith.constant 0 : index
    %c0_4 = arith.constant 0 : index
    %3 = vector.load %arg3[%c0_3, %c0_4] : memref<1x128xf32, #tpu.memory_space<vmem>>, vector<1x128xf32>
    %4 = vector.broadcast %3 : vector<1x128xf32> to vector<8x128xf32>
    %5 = arith.addf %2, %4 : vector<8x128xf32>
    %c0_5 = arith.constant 0 : index
    %c0_6 = arith.constant 0 : index
    %6 = vector.load %arg4[%c0_5, %c0_6] : memref<1x128xf32, #tpu.memory_space<vmem>>, vector<1x128xf32>
    %c0_7 = arith.constant 0 : index
    %c0_8 = arith.constant 0 : index
    %7 = vector.load %arg5[%c0_7, %c0_8] : memref<1x128xf32, #tpu.memory_space<vmem>>, vector<1x128xf32>
    %cst_9 = arith.constant dense<0.000000e+00> : vector<8xf32>
    %8 = vector.multi_reduction <add>, %5, %cst_9 [1] : vector<8x128xf32> to vector<8xf32>
    %9 = vector.shape_cast %8 : vector<8xf32> to vector<8x1xf32>
    %10 = arith.mulf %5, %5 : vector<8x128xf32>
    %cst_10 = arith.constant dense<0.000000e+00> : vector<8xf32>
    %11 = vector.multi_reduction <add>, %10, %cst_10 [1] : vector<8x128xf32> to vector<8xf32>
    %12 = vector.shape_cast %11 : vector<8xf32> to vector<8x1xf32>
    %cst_11 = arith.constant 3.125000e-02 : f32
    %13 = vector.broadcast %cst_11 : f32 to vector<8x1xf32>
    %14 = arith.mulf %9, %13 : vector<8x1xf32>
    %cst_12 = arith.constant 3.125000e-02 : f32
    %15 = vector.broadcast %cst_12 : f32 to vector<8x1xf32>
    %16 = arith.mulf %12, %15 : vector<8x1xf32>
    %17 = arith.mulf %14, %14 : vector<8x1xf32>
    %18 = arith.subf %16, %17 : vector<8x1xf32>
    %cst_13 = arith.constant 0.000000e+00 : f32
    %19 = vector.broadcast %cst_13 : f32 to vector<8x1xf32>
    %20 = arith.maximumf %18, %19 : vector<8x1xf32>
    %21 = vector.broadcast %14 : vector<8x1xf32> to vector<8x128xf32>
    %22 = arith.subf %5, %21 : vector<8x128xf32>
    %cst_14 = arith.constant 9.99999974E-6 : f32
    %23 = vector.broadcast %cst_14 : f32 to vector<8x1xf32>
    %24 = arith.addf %20, %23 : vector<8x1xf32>
    %25 = math.rsqrt %24 : vector<8x1xf32>
    %26 = vector.broadcast %25 : vector<8x1xf32> to vector<8x128xf32>
    %27 = arith.mulf %22, %26 : vector<8x128xf32>
    %28 = vector.broadcast %6 : vector<1x128xf32> to vector<8x128xf32>
    %29 = arith.mulf %27, %28 : vector<8x128xf32>
    %30 = vector.broadcast %7 : vector<1x128xf32> to vector<8x128xf32>
    %31 = arith.addf %29, %30 : vector<8x128xf32>
    %cst_15 = arith.constant 0.000000e+00 : f32
    %32 = vector.broadcast %cst_15 : f32 to vector<8x128xf32>
    %33 = arith.maximumf %31, %32 : vector<8x128xf32>
    %c0_16 = arith.constant 0 : index
    %c0_17 = arith.constant 0 : index
    %34 = vector.load %arg6[%c0_16, %c0_17] : memref<128x128xf32, #tpu.memory_space<vmem>>, vector<128x128xf32>
    %cst_18 = arith.constant dense<0.000000e+00> : vector<8x128xf32>
    %35 = tpu.matmul %33, %34, %cst_18 {dimension_numbers = #tpu.dot_dimension_numbers<[1], [0], [0], [1], [0, 0, 1, 1], [], []>} : vector<8x128xf32>, vector<128x128xf32>, vector<8x128xf32> -> vector<8x128xf32>
    %c0_19 = arith.constant 0 : index
    %c0_20 = arith.constant 0 : index
    %36 = vector.load %arg7[%c0_19, %c0_20] : memref<1x128xf32, #tpu.memory_space<vmem>>, vector<1x128xf32>
    %37 = vector.broadcast %36 : vector<1x128xf32> to vector<8x128xf32>
    %38 = arith.addf %35, %37 : vector<8x128xf32>
    %c0_21 = arith.constant 0 : index
    %c0_22 = arith.constant 0 : index
    %39 = vector.load %arg8[%c0_21, %c0_22] : memref<1x128xf32, #tpu.memory_space<vmem>>, vector<1x128xf32>
    %c0_23 = arith.constant 0 : index
    %c0_24 = arith.constant 0 : index
    %40 = vector.load %arg9[%c0_23, %c0_24] : memref<1x128xf32, #tpu.memory_space<vmem>>, vector<1x128xf32>
    %cst_25 = arith.constant dense<0.000000e+00> : vector<8xf32>
    %41 = vector.multi_reduction <add>, %38, %cst_25 [1] : vector<8x128xf32> to vector<8xf32>
    %42 = vector.shape_cast %41 : vector<8xf32> to vector<8x1xf32>
    %43 = arith.mulf %38, %38 : vector<8x128xf32>
    %cst_26 = arith.constant dense<0.000000e+00> : vector<8xf32>
    %44 = vector.multi_reduction <add>, %43, %cst_26 [1] : vector<8x128xf32> to vector<8xf32>
    %45 = vector.shape_cast %44 : vector<8xf32> to vector<8x1xf32>
    %cst_27 = arith.constant 3.125000e-02 : f32
    %46 = vector.broadcast %cst_27 : f32 to vector<8x1xf32>
    %47 = arith.mulf %42, %46 : vector<8x1xf32>
    %cst_28 = arith.constant 3.125000e-02 : f32
    %48 = vector.broadcast %cst_28 : f32 to vector<8x1xf32>
    %49 = arith.mulf %45, %48 : vector<8x1xf32>
    %50 = arith.mulf %47, %47 : vector<8x1xf32>
    %51 = arith.subf %49, %50 : vector<8x1xf32>
    %cst_29 = arith.constant 0.000000e+00 : f32
    %52 = vector.broadcast %cst_29 : f32 to vector<8x1xf32>
    %53 = arith.maximumf %51, %52 : vector<8x1xf32>
    %54 = vector.broadcast %47 : vector<8x1xf32> to vector<8x128xf32>
    %55 = arith.subf %38, %54 : vector<8x128xf32>
    %cst_30 = arith.constant 9.99999974E-6 : f32
    %56 = vector.broadcast %cst_30 : f32 to vector<8x1xf32>
    %57 = arith.addf %53, %56 : vector<8x1xf32>
    %58 = math.rsqrt %57 : vector<8x1xf32>
    %59 = vector.broadcast %58 : vector<8x1xf32> to vector<8x128xf32>
    %60 = arith.mulf %55, %59 : vector<8x128xf32>
    %61 = vector.broadcast %39 : vector<1x128xf32> to vector<8x128xf32>
    %62 = arith.mulf %60, %61 : vector<8x128xf32>
    %63 = vector.broadcast %40 : vector<1x128xf32> to vector<8x128xf32>
    %64 = arith.addf %62, %63 : vector<8x128xf32>
    %cst_31 = arith.constant 0.000000e+00 : f32
    %65 = vector.broadcast %cst_31 : f32 to vector<8x128xf32>
    %66 = arith.maximumf %64, %65 : vector<8x128xf32>
    %c0_32 = arith.constant 0 : index
    %c0_33 = arith.constant 0 : index
    %67 = vector.load %arg10[%c0_32, %c0_33] : memref<128x4xf32, #tpu.memory_space<vmem>>, vector<128x4xf32>
    %cst_34 = arith.constant dense<0.000000e+00> : vector<8x4xf32>
    %68 = tpu.matmul %66, %67, %cst_34 {dimension_numbers = #tpu.dot_dimension_numbers<[1], [0], [0], [1], [0, 0, 1, 1], [], []>} : vector<8x128xf32>, vector<128x4xf32>, vector<8x4xf32> -> vector<8x4xf32>
    %c0_35 = arith.constant 0 : index
    %c0_36 = arith.constant 0 : index
    %69 = vector.load %arg11[%c0_35, %c0_36] : memref<1x4xf32, #tpu.memory_space<vmem>>, vector<1x4xf32>
    %70 = vector.broadcast %69 : vector<1x4xf32> to vector<8x4xf32>
    %71 = arith.addf %68, %70 : vector<8x4xf32>
    %72 = math.tanh %71 : vector<8x4xf32>
    %c0_37 = arith.constant 0 : index
    %c0_38 = arith.constant 0 : index
    %73 = vector.load %arg12[%c0_37, %c0_38] : memref<8x4xf32, #tpu.memory_space<vmem>>, vector<8x4xf32>
    tpu.vector_store %arg12[%c0_37, %c0_38], %72 {strides = array<i32>} : memref<8x4xf32, #tpu.memory_space<vmem>>, vector<8x4xf32>,
    return
  }
  func.func @transform_0(%arg0: i32) -> (i32, i32) {
    %c0_i32 = arith.constant 0 : i32
    %c0_i32_0 = arith.constant 0 : i32
    return %arg0, %c0_i32 : i32, i32
  }
  func.func @transform_1(%arg0: i32) -> (i32, i32) {
    %c0_i32 = arith.constant 0 : i32
    %c0_i32_0 = arith.constant 0 : i32
    %c0_i32_1 = arith.constant 0 : i32
    return %c0_i32, %c0_i32_0 : i32, i32
  }
  func.func @transform_2(%arg0: i32) -> (i32, i32) {
    %c0_i32 = arith.constant 0 : i32
    %c0_i32_0 = arith.constant 0 : i32
    %c0_i32_1 = arith.constant 0 : i32
    return %c0_i32, %c0_i32_0 : i32, i32
  }
  func.func @transform_3(%arg0: i32) -> (i32, i32) {
    %c0_i32 = arith.constant 0 : i32
    %c0_i32_0 = arith.constant 0 : i32
    %c0_i32_1 = arith.constant 0 : i32
    return %c0_i32, %c0_i32_0 : i32, i32
  }
  func.func @transform_4(%arg0: i32) -> (i32, i32) {
    %c0_i32 = arith.constant 0 : i32
    %c0_i32_0 = arith.constant 0 : i32
    %c0_i32_1 = arith.constant 0 : i32
    return %c0_i32, %c0_i32_0 : i32, i32
  }
  func.func @transform_5(%arg0: i32) -> (i32, i32) {
    %c0_i32 = arith.constant 0 : i32
    %c0_i32_0 = arith.constant 0 : i32
    %c0_i32_1 = arith.constant 0 : i32
    return %c0_i32, %c0_i32_0 : i32, i32
  }
  func.func @transform_6(%arg0: i32) -> (i32, i32) {
    %c0_i32 = arith.constant 0 : i32
    %c0_i32_0 = arith.constant 0 : i32
    %c0_i32_1 = arith.constant 0 : i32
    return %c0_i32, %c0_i32_0 : i32, i32
  }
  func.func @transform_7(%arg0: i32) -> (i32, i32) {
    %c0_i32 = arith.constant 0 : i32
    %c0_i32_0 = arith.constant 0 : i32
    %c0_i32_1 = arith.constant 0 : i32
    return %c0_i32, %c0_i32_0 : i32, i32
  }
  func.func @transform_8(%arg0: i32) -> (i32, i32) {
    %c0_i32 = arith.constant 0 : i32
    %c0_i32_0 = arith.constant 0 : i32
    %c0_i32_1 = arith.constant 0 : i32
    return %c0_i32, %c0_i32_0 : i32, i32
  }
  func.func @transform_9(%arg0: i32) -> (i32, i32) {
    %c0_i32 = arith.constant 0 : i32
    %c0_i32_0 = arith.constant 0 : i32
    %c0_i32_1 = arith.constant 0 : i32
    return %c0_i32, %c0_i32_0 : i32, i32
  }
  func.func @transform_10(%arg0: i32) -> (i32, i32) {
    %c0_i32 = arith.constant 0 : i32
    %c0_i32_0 = arith.constant 0 : i32
    %c0_i32_1 = arith.constant 0 : i32
    return %c0_i32, %c0_i32_0 : i32, i32
  }
  func.func @transform_11(%arg0: i32) -> (i32, i32) {
    %c0_i32 = arith.constant 0 : i32
    %c0_i32_0 = arith.constant 0 : i32
    return %arg0, %c0_i32 : i32, i32
  }
}

</mosaic_0001>

<bundles_post_ra>
// kernel: tpu_custom_call.1
= control target key start
LH: loop header
LB: loop body
LE: loop exit
PB: predicated region body
PF: predicated region fallthrough
CT: control target
= control target key end

     0   :  { %16 = vsyncpa [#allocation3], 0  ;;  %v592_v2 = vmov 0.0   ;;  %vm593_vm0 = vmmov 0   ;;  %vm48_vm1 = vcmask 64512   ;;  %v594_v3 = vmov 0.0|0.0   ;;  %s809_s0 = inlined_call_operand.vmem [shape: f32[2,8], index: 0, kind: input, shape index: {}]   ;;  %s810_s1 = inlined_call_operand.vmem [shape: f32[8,128], index: 1, kind: input, shape index: {}]   ;;  %s811_s2 = inlined_call_operand.vmem [shape: f32[1,128], index: 2, kind: input, shape index: {}]   ;;  %s812_s3 = inlined_call_operand.vmem [shape: f32[1,128], index: 3, kind: input, shape index: {}]   ;;  %s813_s4 = inlined_call_operand.vmem [shape: f32[1,128], index: 4, kind: input, shape index: {}]   ;;  %s814_s5 = inlined_call_operand.vmem [shape: f32[128,128], index: 5, kind: input, shape index: {}]   ;;  %s815_s6 = inlined_call_operand.vmem [shape: f32[1,128], index: 6, kind: input, shape index: {}]   ;;  %s816_s7 = inlined_call_operand.vmem [shape: f32[1,128], index: 7, kind: input, shape index: {}]   ;;  %s817_s8 = inlined_call_operand.vmem [shape: f32[1,128], index: 8, kind: input, shape index: {}]   ;;  %s818_s9 = inlined_call_operand.vmem [shape: f32[128,4], index: 9, kind: input, shape index: {}]   ;;  %s819_s10 = inlined_call_operand.vmem [shape: f32[1,4], index: 10, kind: input, shape index: {}]   ;;  %s820_s11 = inlined_call_operand.hbm [shape: f32[2,4], index: 11, kind: output, shape index: {}]  }
   0x1   :  { %v40_v0 = vld [vmem:[%s810_s1] sm:$0xff]  ;;  %433 = vmatprep.subr.mxu0 %v592_v2  ;;  %435 = vmatprep.mubr.msk.f32.mxu0 %vm593_vm0, %v592_v2  ;;  %v154_v10 = vld [vmem:[%s814_s5 + $0x8] sm:$0xff]  ;;  %v155_v12 = vld [vmem:[%s814_s5 + $0x10] sm:$0xff]  ;;  %vm371_vm2 = vcmask 31744  }
   0x2   :  { %v39_v1 = vld [vmem:[%s809_s0] sm:$0xff]  ;;  %434 = vmatpush3.msra.mxu0 %v40_v0  ;;  %470 = vmatprep.mubr.msk.f32.mxu1 %vm593_vm0, %v592_v2  ;;  %v156_v13 = vld [vmem:[%s814_s5 + $0x18] sm:$0xff]  ;;  %v158_v16 = vld [vmem:[%s814_s5 + $0x28] sm:$0xff] }
   0x3   :  { %436 = vmatmul.mubr.msk.f32.vlgmr.msra.gmra.mrb[0].mxu0 %vm48_vm1, %v39_v1  ;;  %508 = vmatprep.subr.bf16.mxu1 %v594_v3  ;;  %v389_v4 = vld [vmem:[%s811_s2] ss:$0 sm:$0xff]  ;;  %v512_v14 = vpack.c.bf16 %v156_v13, %v155_v12  ;;  %v159_v18 = vld [vmem:[%s814_s5 + $0x30] sm:$0xff]  ;;  %v160_v19 = vld [vmem:[%s814_s5 + $0x38] sm:$0xff] }
   0x4   :  { %505 = vmatprep.mubr.msk.f32.mxu0 %vm593_vm0, %v592_v2  ;;  %532 = vmatprep.subr.bf16.mxu0 %v594_v3  ;;  %v153_v9 = vld [vmem:[%s814_s5] sm:$0xff]  ;;  %v518_v20 = vpack.c.bf16 %v160_v19, %v159_v18  ;;  %v162_v22 = vld [vmem:[%s814_s5 + $0x48] sm:$0xff]  ;;  %v163_v24 = vld [vmem:[%s814_s5 + $0x50] sm:$0xff] }
   0x5   :  { %v509_v11 = vpack.c.bf16 %v154_v10, %v153_v9  ;;  %v157_v15 = vld [vmem:[%s814_s5 + $0x20] sm:$0xff]  ;;  %v164_v25 = vld [vmem:[%s814_s5 + $0x58] sm:$0xff]  ;;  %v166_v28 = vld [vmem:[%s814_s5 + $0x68] sm:$0xff] }
   0x6   :  { %v515_v17 = vpack.c.bf16 %v158_v16, %v157_v15  ;;  %v161_v21 = vld [vmem:[%s814_s5 + $0x40] sm:$0xff]  ;;  %v524_v26 = vpack.c.bf16 %v164_v25, %v163_v24  ;;  %v167_v30 = vld [vmem:[%s814_s5 + $0x70] sm:$0xff]  ;;  %v168_v31 = vld [vmem:[%s814_s5 + $0x78] sm:$0xff] }
   0x7   :  { %510 = vmatpush3.bf16.msra.mxu1 %v509_v11  ;;  %v521_v23 = vpack.c.bf16 %v162_v22, %v161_v21  ;;  %v165_v27 = vld [vmem:[%s814_s5 + $0x60] sm:$0xff]  ;;  %v530_v32 = vpack.c.bf16 %v168_v31, %v167_v30  ;;  %v278_v55 = vld [vmem:[%s818_s9 + $0x8] sm:$0xff]  ;;  %v279_v57 = vld [vmem:[%s818_s9 + $0x10] sm:$0xff] }
   0x8   :  { %511 = vmatprep.subr.bf16.mxu1 %v594_v3  ;;  %v527_v29 = vpack.c.bf16 %v166_v28, %v165_v27  ;;  %v391_v43 = vld [vmem:[%s812_s3] ss:$0 sm:$0xff]  ;;  %v280_v58 = vld [vmem:[%s818_s9 + $0x18] sm:$0xff]  ;;  %v282_v61 = vld [vmem:[%s818_s9 + $0x28] sm:$0xff] }
   0x9   :  { %v392_v45 = vld [vmem:[%s813_s4] ss:$0 sm:$0xff]  ;;  %v536_v59 = vpack.c.bf16 %v280_v58, %v279_v57  ;;  %v283_v63 = vld [vmem:[%s818_s9 + $0x30] sm:$0xff]  ;;  %v284_v0 = vld [vmem:[%s818_s9 + $0x38] sm:$0xff] }
   0xa   :  { %v393_v49 = vld [vmem:[%s815_s6] ss:$0 sm:$0xff]  ;;  %v542_v1 = vpack.c.bf16 %v284_v0, %v283_v63  ;;  %v290_v10 = vld [vmem:[%s818_s9 + $0x68] sm:$0xff]  ;;  %v291_v12 = vld [vmem:[%s818_s9 + $0x70] sm:$0xff] }
   0xb   :  { %513 = vmatpush3.bf16.msra.mxu1 %v512_v14  ;;  %v277_v54 = vld [vmem:[%s818_s9] sm:$0xff]  ;;  %v292_v13 = vld [vmem:[%s818_s9 + $0x78] sm:$0xff] }
   0xc   :  { %514 = vmatprep.subr.bf16.mxu1 %v594_v3  ;;  %v533_v56 = vpack.c.bf16 %v278_v55, %v277_v54  ;;  %v281_v60 = vld [vmem:[%s818_s9 + $0x20] sm:$0xff]  ;;  %v554_v14 = vpack.c.bf16 %v292_v13, %v291_v12 }
   0xd   :  { %v539_v62 = vpack.c.bf16 %v282_v61, %v281_v60  ;;  %v285_v2 = vld [vmem:[%s818_s9 + $0x40] sm:$0xff] }
   0xe   :  { %534 = vmatpush3.bf16.msra.mxu0 %v533_v56  ;;  %v289_v9 = vld [vmem:[%s818_s9 + $0x60] sm:$0xff] }
   0xf   :  { %516 = vmatpush3.bf16.msra.mxu1 %v515_v17  ;;  %535 = vmatprep.subr.bf16.mxu0 %v594_v3  ;;  %v551_v11 = vpack.c.bf16 %v290_v10, %v289_v9  ;;  %v394_v25 = vld [vmem:[%s816_s7] ss:$0 sm:$0xff] }
  0x10   :  { %517 = vmatprep.subr.bf16.mxu1 %v594_v3  ;;  %v396_v30 = vld [vmem:[%s819_s10] ss:$0 sm:$0xff] }
  0x12   :  { %537 = vmatpush3.bf16.msra.mxu0 %v536_v59 }
  0x13   :  { %519 = vmatpush3.bf16.msra.mxu1 %v518_v20  ;;  %538 = vmatprep.subr.bf16.mxu0 %v594_v3 }
  0x14   :  { %520 = vmatprep.subr.bf16.mxu1 %v594_v3 }
  0x16   :  { %540 = vmatpush3.bf16.msra.mxu0 %v539_v62 }
  0x17   :  { %522 = vmatpush3.bf16.msra.mxu1 %v521_v23  ;;  %541 = vmatprep.subr.bf16.mxu0 %v594_v3 }
  0x18   :  { %523 = vmatprep.subr.bf16.mxu1 %v594_v3 }
  0x1a   :  { %543 = vmatpush3.bf16.msra.mxu0 %v542_v1 }
  0x1b   :  { %525 = vmatpush3.bf16.msra.mxu1 %v524_v26  ;;  %544 = vmatprep.subr.bf16.mxu0 %v594_v3 }
  0x1c   :  { %526 = vmatprep.subr.bf16.mxu1 %v594_v3 }
  0x1f   :  { %528 = vmatpush3.bf16.msra.mxu1 %v527_v29 }
  0x20   :  { %529 = vmatprep.subr.bf16.mxu1 %v594_v3 }
  0x23   :  { %531 = vmatpush3.bf16.msra.mxu1 %v530_v32 }
  0xd6   :  { %v118_v5 = vpop.f32.mrb[0].mxu0 }
  0xd7   :  { %v119_v6 = vadd.f32 %v389_v4, %v118_v5  ;;  %v437_v7 = vpop.f32.mrb[1].mxu0  ;;  %v286_v4 = vld [vmem:[%s818_s9 + $0x48] sm:$0xff] }
  0xd8   :  { %v545_v5 = vpack.c.bf16 %v286_v4, %v285_v2  ;;  %v288_v7 = vld [vmem:[%s818_s9 + $0x58] sm:$0xff] }
  0xd9   :  { %124 = vadd.xlane.f32.xlu0 %v119_v6  ;;  %v126_v8 = vmul.f32 %v119_v6, %v119_v6 }
  0xda   :  { %546 = vmatpush3.bf16.msra.mxu0 %v545_v5 }
  0xdb   :  { %547 = vmatprep.subr.bf16.mxu0 %v594_v3 }
  0xdd   :  { %127 = vadd.xlane.f32.xlu0 %v126_v8 }
 0x166   :  { %v125_v33 = vpop.xlane.xlu0 %124 }
 0x167   :  { %v129_v34 = vmul.f32 0.03125, %v125_v33 }
 0x169   :  { %v131_v36 = vmul.f32 %v129_v34, %v129_v34  ;;  %v134_v41 = vsub.f32 %v119_v6, %v129_v34  ;;  %v287_v6 = vld [vmem:[%s818_s9 + $0x50] sm:$0xff] }
 0x16a   :  { %v128_v35 = vpop.xlane.xlu0 %127  ;;  %v548_v8 = vpack.c.bf16 %v288_v7, %v287_v6 }
 0x16b   :  { %v130_v37 = vmul.f32 0.03125, %v128_v35 }
 0x16c   :  { %549 = vmatpush3.bf16.msra.mxu0 %v548_v8 }
 0x16d   :  { %v132_v38 = vsub.f32 %v130_v37, %v131_v36  ;;  %550 = vmatprep.subr.bf16.mxu0 %v594_v3 }
 0x16f   :  { %v133_v39 = vmax.f32 %v132_v38, 0.0 }
 0x170   :  { %552 = vmatpush3.bf16.msra.mxu0 %v551_v11 }
 0x171   :  { %v135_v40 = vadd.f32 1e-05, %v133_v39  ;;  %553 = vmatprep.subr.bf16.mxu0 %v594_v3  ;;  %v395_v3 = vld [vmem:[%s817_s8] ss:$0 sm:$0xff] }
 0x173   :  { %562 = vrsqrt.f32 %v135_v40 }
 0x174   :  { %555 = vmatpush3.bf16.msra.mxu0 %v554_v14 }
 0x17d   :  { %v563_v42 = vpop.eup %562 }
 0x17e   :  { %v137_v44 = vmul.f32 %v563_v42, %v134_v41 }
 0x180   :  { %v144_v46 = vmul.f32 %v391_v43, %v137_v44 }
 0x182   :  { %v151_v47 = vadd.f32 %v392_v45, %v144_v46 }
 0x184   :  { %v152_v48 = vmax.f32 %v151_v47, 0.0 }
 0x186   :  { %471 = vmatmul.mubr.f32.vlgmr.msra.gmra.mrb[0].mxu1 %v152_v48 }
 0x259   :  { %v242_v50 = vpop.f32.mrb[0].mxu1 }
 0x25a   :  { %v243_v51 = vadd.f32 %v393_v49, %v242_v50  ;;  %v472_v52 = vpop.f32.mrb[1].mxu1 }
 0x25c   :  { %248 = vadd.xlane.f32.xlu1 %v243_v51  ;;  %v250_v53 = vmul.f32 %v243_v51, %v243_v51 }
 0x260   :  { %251 = vadd.xlane.f32.xlu1 %v250_v53 }
 0x2e9   :  { %v249_v15 = vpop.xlane.xlu1 %248 }
 0x2ea   :  { %v253_v16 = vmul.f32 0.03125, %v249_v15 }
 0x2ec   :  { %v255_v18 = vmul.f32 %v253_v16, %v253_v16  ;;  %v258_v23 = vsub.f32 %v243_v51, %v253_v16 }
 0x2ed   :  { %v252_v17 = vpop.xlane.xlu1 %251 }
 0x2ee   :  { %v254_v19 = vmul.f32 0.03125, %v252_v17 }
 0x2f0   :  { %v256_v20 = vsub.f32 %v254_v19, %v255_v18 }
 0x2f2   :  { %v257_v21 = vmax.f32 %v256_v20, 0.0 }
 0x2f4   :  { %v259_v22 = vadd.f32 1e-05, %v257_v21 }
 0x2f6   :  { %564 = vrsqrt.f32 %v259_v22 }
 0x300   :  { %v565_v24 = vpop.eup %564 }
 0x301   :  { %v261_v26 = vmul.f32 %v565_v24, %v258_v23 }
 0x303   :  { %v268_v27 = vmul.f32 %v394_v25, %v261_v26 }
 0x305   :  { %v275_v28 = vadd.f32 %v395_v3, %v268_v27 }
 0x307   :  { %v276_v29 = vmax.f32 %v275_v28, 0.0 }
 0x309   :  { %506 = vmatmul.mubr.f32.vlgmr.msra.gmra.mrb[2].mxu0 %v276_v29 }
 0x3dc   :  { %v366_v31 = vpop.f32.mrb[2].mxu0 }
 0x3dd   :  { %v367_v32 = vadd.f32 %v396_v30, %v366_v31  ;;  %v507_v33 = vpop.f32.mrb[3].mxu0 }
 0x3df   :  { %566 = vtanh.f32 %v367_v32 }
 0x3e9   :  { %v567_v34 = vpop.eup %566 }
 0x3ea   :  { %372 = vst.msk [vmem:[#allocation2] sm:$0xff] %vm371_vm2, %v567_v34 }
 0x3eb   :  { %377 = vsyncadd [#allocation3], 96  ;;  %s595_s7 = smov [#allocation2]  }
 0x3ec   :  { %s378_s22 = sshll.u32 %s595_s7, 4  ;;  %s379_s22 = int_to_ptr.vmem [resolvable:$true] %s378_s22 }
 0x3ed   :  { %s568_s8 = scalar_lea.vmem %s379_s22, 32  ;;  %s572_s23 = scalar_lea.vmem %s379_s22, 128 }
 0x3ee   :  { %p569_p0 = scmp.ne.s32.totalorder %s379_s22, %s568_s8  ;;  %p573_p1 = scmp.lt.s32.totalorder %s379_s22, %s379_s22 }
 0x3ef   :  { %p574_p2 = scmp.lt.s32.totalorder %s572_s23, %s568_s8 }
 0x3f1   :  { %p575_p3 = por %p574_p2, %p573_p1 }
 0x3f3   :  { %p576_p4 = pnand %p575_p3, %p569_p0 }
 0x3f5   :  { %579 = shalt.err (!%p576_p4)
}
 0x3f6   :  { %s580_s25 = scalar_lea.hbm %s820_s11, 32 }
 0x3f7   :  { %p581_p5 = scmp.ne.s32.totalorder %s820_s11, %s580_s25  ;;  %p584_p6 = scmp.lt.u32.totalorder %s580_s25, %s820_s11 }
 0x3f9   :  { %p586_p7 = pnand %p584_p6, %p581_p5 }
 0x3fb   :  { %589 = shalt.err (!%p586_p7)
}
 0x3fc   :  { %s596_s29 = smov 32   ;;  %s597_s30 = smov 2  }
 0x3fd   :  { %384 = dma.vmem_to_hbm [thread:$0]  %s379_s22, 32, %s820_s11, [#allocation3], %s596_s29, %s596_s29, %s597_s30  }
 0x3fe   :  { %590 = dma.done.wait [#allocation3], 128  }
 0x3ff   :  { %591 = vsyncadd [#allocation3], 4294967168 }
 0x400   :  { %388 = vsyncpa [#allocation3], 1 }

</bundles_post_ra>
